<compile_context>
chip_gen: v5e
topology: v5e:2x2
jax: 0.10.0
libtpu: 0.0.40
codegen_flags: <defaults>
</compile_context>

<pallas_src>
import math
import functools

import jax
import jax.numpy as jnp
from jax.experimental import pallas as pl
from jax.experimental.pallas import tpu as pltpu


# ----------------------------------------------------------------------------
# Kernel: out = (x0@W0) [* scale] * (x1@W1) * ...   (fused matmuls + products)
# ----------------------------------------------------------------------------
def _random_layer_kernel(*refs, num_inputs: int, scale: float):
    # refs layout: x0, w0, x1, w1, ..., x_{n-1}, w_{n-1}, out
    out_ref = refs[-1]
    acc = jnp.dot(refs[0][...], refs[1][...], preferred_element_type=jnp.float32)
    if scale != 1.0:
        acc = acc * jnp.float32(scale)
    for i in range(1, num_inputs):
        acc = acc * jnp.dot(refs[2 * i][...], refs[2 * i + 1][...],
                            preferred_element_type=jnp.float32)
    out_ref[...] = acc.astype(out_ref.dtype)


# ----------------------------------------------------------------------------
# Helpers: block sizing + VMEM footprint estimate
# ----------------------------------------------------------------------------
def _pick_block(total: int, preferred: int, align: int) -> int:
    """Largest divisor of `total` that is a multiple of `align` and <= preferred.
    Falls back to the full extent when not alignable (full blocks are legal)."""
    if total % align != 0 or total <= align:
        return total
    b = (min(preferred, total) // align) * align
    while total % b != 0:
        b -= align
    return b


def _vmem_footprint_bytes(bn, bk, dims, in_itemsize, out_itemsize):
    # Double-buffered input blocks + double-buffered output block
    ins = 2 * sum(bn * d + d * bk for d in dims) * in_itemsize
    outs = 2 * bn * bk * out_itemsize
    # f32 matmul results / accumulator temporaries inside the kernel body
    temps = (len(dims) + 1) * bn * bk * 4
    return ins + outs + temps


# ----------------------------------------------------------------------------
# Wrapper
# ----------------------------------------------------------------------------
def random_layer_forward(input_list, random_matrices, *, apply_scale=True,
                         out_dtype=None):
    """input_list[i]: (N, D_i); random_matrices[i]: (D_i, K) -> (N, K).

    apply_scale=False assumes the 1/K^(1/num) factor was folded into
    random_matrices[0] at init (one-time transform; weights are fixed buffers).
    out_dtype=jnp.bfloat16 halves the dominant output write stream if desired.
    """
    num = len(input_list)
    assert num == len(random_matrices) and num >= 1
    N = input_list[0].shape[0]
    K = random_matrices[0].shape[1]
    dims = [x.shape[1] for x in input_list]
    for x, w, d in zip(input_list, random_matrices, dims):
        assert x.shape == (N, d) and w.shape == (d, K)

    out_dtype = out_dtype if out_dtype is not None else input_list[0].dtype
    scale = (1.0 / math.pow(float(K), 1.0 / num)) if apply_scale else 1.0

    in_itemsize = jnp.dtype(input_list[0].dtype).itemsize
    out_itemsize = jnp.dtype(out_dtype).itemsize
    align_n = 16 if in_itemsize == 2 else 8       # bf16 packs 16 rows / sublane vreg

    # Large output tiles: kernel is HBM-bound, amortize per-grid-step overhead.
    bn = _pick_block(N, 512, align_n)
    bk = _pick_block(K, 1024, 128)                # lane-dense (multiple of 128)

    # Keep the working set comfortably inside scoped VMEM on every TPU gen.
    VMEM_BUDGET = 14 * 1024 * 1024
    while _vmem_footprint_bytes(bn, bk, dims, in_itemsize, out_itemsize) > VMEM_BUDGET:
        if bk % 256 == 0 and K % (bk // 2) == 0:
            bk //= 2
        elif bn % (2 * align_n) == 0 and N % (bn // 2) == 0:
            bn //= 2
        else:
            break

    gn, gk = N // bn, K // bk

    # v7x has 2 TensorCores: ensure a 'parallel' axis has >= 2 steps when the
    # problem is big enough to be worth splitting (skip for tiny CDAN batches).
    if gn == 1 and gk == 1 and N * K * out_itemsize >= (4 << 20):
        if bk % 256 == 0:
            bk //= 2
        elif bn % (2 * align_n) == 0:
            bn //= 2
        gn, gk = N // bn, K // bk

    # Grid order: blocks indexed by the *inner* (fast) axis are re-DMA'd once
    # per outer block.  Pick the order minimizing redundant HBM reads
    # (usually K-outer: weights (sum D_i, K) stay resident, tiny activations
    # are re-streamed instead).
    sum_d = sum(dims)
    traffic_n_outer = gn * sum_d * K + N * sum_d      # weights re-streamed / n block
    traffic_k_outer = sum_d * K + gk * N * sum_d      # activations re-streamed / k block
    k_outer = (gn > 1 or gk > 1) and traffic_k_outer < traffic_n_outer

    if k_outer:
        grid = (gk, gn)
        x_map = lambda k, n: (n, 0)
        w_map = lambda k, n: (0, k)
        o_map = lambda k, n: (n, k)
    else:
        grid = (gn, gk)
        x_map = lambda n, k: (n, 0)
        w_map = lambda n, k: (0, k)
        o_map = lambda n, k: (n, k)

    in_specs = []
    args = []
    for x, w in zip(input_list, random_matrices):
        d = x.shape[1]
        in_specs.append(pl.BlockSpec((bn, d), x_map))     # activations
        in_specs.append(pl.BlockSpec((d, bk), w_map))     # random matrices
        args.append(x)
        args.append(w)

    kernel = functools.partial(_random_layer_kernel, num_inputs=num, scale=scale)

    footprint = _vmem_footprint_bytes(bn, bk, dims, in_itemsize, out_itemsize)
    vmem_limit = int(min(max(2 * footprint, 32 * 1024 * 1024), 64 * 1024 * 1024))

    return pl.pallas_call(
        kernel,
        out_shape=jax.ShapeDtypeStruct((N, K), out_dtype),
        grid=grid,
        in_specs=in_specs,
        out_specs=pl.BlockSpec((bn, bk), o_map),
        compiler_params=pltpu.CompilerParams(
            dimension_semantics=("parallel", "parallel"),
            vmem_limit_bytes=vmem_limit),
    )(*args)


# ----------------------------------------------------------------------------
# Pure-JAX reference (mirrors the PyTorch forward exactly)
# ----------------------------------------------------------------------------
def _reference(input_list, random_matrices):
    return_list = [x @ w for x, w in zip(input_list, random_matrices)]
    out = return_list[0] / math.pow(float(random_matrices[0].shape[1]),
                                    1.0 / len(return_list))
    for single in return_list[1:]:
        out = out * single
    return out


# ----------------------------------------------------------------------------
# Demo / self-check
# ----------------------------------------------------------------------------
if __name__ == "__main__":
    key = jax.random.PRNGKey(0)

    def make_case(key, batch, input_dim_list, output_dim):
        keys = jax.random.split(key, 2 * len(input_dim_list))
        xs = [jax.random.normal(keys[i], (batch, d), dtype=jnp.float32)
              for i, d in enumerate(input_dim_list)]
        ws = [jax.random.normal(keys[len(input_dim_list) + i], (d, output_dim),
                                dtype=jnp.float32)
              for i, d in enumerate(input_dim_list)]
        return xs, ws

    ok = True

    # Case 1: canonical small CDAN-style usage (features + class probs).
    k1, k2 = jax.random.split(key)
    xs, ws = make_case(k1, batch=4, input_dim_list=[32, 8], output_dim=256)
    ref = _reference(xs, ws)

    # 1a) scale applied inside the kernel.
    out_a = jax.block_until_ready(random_layer_forward(xs, ws, apply_scale=True))
    ok &= bool(jnp.allclose(out_a, ref, atol=2e-2, rtol=2e-2))

    # 1b) scale folded into W0 once at init (free per-call; kernel skips the mul).
    scale0 = 1.0 / math.pow(float(ws[0].shape[1]), 1.0 / len(ws))
    ws_scaled = [ws[0] * jnp.float32(scale0)] + list(ws[1:])
    out_b = jax.block_until_ready(
        random_layer_forward(xs, ws_scaled, apply_scale=False))
    ok &= bool(jnp.allclose(out_b, ref, atol=2e-2, rtol=2e-2))

    # Case 2: larger shapes to exercise tiling and the K-outer grid order.
    xs2, ws2 = make_case(k2, batch=1024, input_dim_list=[32, 8], output_dim=512)
    ref2 = _reference(xs2, ws2)
    out2 = jax.block_until_ready(random_layer_forward(xs2, ws2, apply_scale=True))
    ok &= bool(jnp.allclose(out2, ref2, atol=2e-2, rtol=2e-2))

    assert out_a.shape == (4, 256) and out2.shape == (1024, 512)
    assert ok, "RandomLayer mismatch"
    print("KERNEL_OK")
</pallas_src>

<mosaic_0001>
module attributes {stable_mosaic.version = 11 : i64} {
  func.func @_random_layer_kernel(%arg0: i32, %arg1: i32, %arg2: memref<4x32xf32, #tpu.memory_space<vmem>>, %arg3: memref<32x256xf32, #tpu.memory_space<vmem>>, %arg4: memref<4x8xf32, #tpu.memory_space<vmem>>, %arg5: memref<8x256xf32, #tpu.memory_space<vmem>>, %arg6: memref<4x256xf32, #tpu.memory_space<vmem>>) attributes {dimension_semantics = [#tpu.dimension_semantics<parallel>, #tpu.dimension_semantics<parallel>], iteration_bounds = array<i64: 1, 1>, scalar_prefetch = 0 : i64, scratch_operands = 0 : i64, tpu.core_type = #tpu.core_type<tc>, window_params = [{transform_indices = @transform_0, window_bounds = array<i64: 4, 32>}, {transform_indices = @transform_1, window_bounds = array<i64: 32, 256>}, {transform_indices = @transform_2, window_bounds = array<i64: 4, 8>}, {transform_indices = @transform_3, window_bounds = array<i64: 8, 256>}, {transform_indices = @transform_4, window_bounds = array<i64: 4, 256>}]} {
    %c0 = arith.constant 0 : index
    %c0_0 = arith.constant 0 : index
    %0 = vector.load %arg2[%c0, %c0_0] : memref<4x32xf32, #tpu.memory_space<vmem>>, vector<4x32xf32>
    %c0_1 = arith.constant 0 : index
    %c0_2 = arith.constant 0 : index
    %1 = vector.load %arg3[%c0_1, %c0_2] : memref<32x256xf32, #tpu.memory_space<vmem>>, vector<32x256xf32>
    %cst = arith.constant dense<0.000000e+00> : vector<4x256xf32>
    %2 = tpu.matmul %0, %1, %cst {dimension_numbers = #tpu.dot_dimension_numbers<[1], [0], [0], [1], [0, 0, 1, 1], [], []>} : vector<4x32xf32>, vector<32x256xf32>, vector<4x256xf32> -> vector<4x256xf32>
    %cst_3 = arith.constant 6.250000e-02 : f32
    %3 = vector.broadcast %cst_3 : f32 to vector<4x256xf32>
    %4 = arith.mulf %2, %3 : vector<4x256xf32>
    %c0_4 = arith.constant 0 : index
    %c0_5 = arith.constant 0 : index
    %5 = vector.load %arg4[%c0_4, %c0_5] : memref<4x8xf32, #tpu.memory_space<vmem>>, vector<4x8xf32>
    %c0_6 = arith.constant 0 : index
    %c0_7 = arith.constant 0 : index
    %6 = vector.load %arg5[%c0_6, %c0_7] : memref<8x256xf32, #tpu.memory_space<vmem>>, vector<8x256xf32>
    %cst_8 = arith.constant dense<0.000000e+00> : vector<4x256xf32>
    %7 = tpu.matmul %5, %6, %cst_8 {dimension_numbers = #tpu.dot_dimension_numbers<[1], [0], [0], [1], [0, 0, 1, 1], [], []>} : vector<4x8xf32>, vector<8x256xf32>, vector<4x256xf32> -> vector<4x256xf32>
    %8 = arith.mulf %4, %7 : vector<4x256xf32>
    %c0_9 = arith.constant 0 : index
    %c0_10 = arith.constant 0 : index
    %9 = vector.load %arg6[%c0_9, %c0_10] : memref<4x256xf32, #tpu.memory_space<vmem>>, vector<4x256xf32>
    tpu.vector_store %arg6[%c0_9, %c0_10], %8 {strides = array<i32>} : memref<4x256xf32, #tpu.memory_space<vmem>>, vector<4x256xf32>,
    return
  }
  func.func @transform_0(%arg0: i32, %arg1: i32) -> (i32, i32) {
    %c0_i32 = arith.constant 0 : i32
    %c0_i32_0 = arith.constant 0 : i32
    return %arg0, %c0_i32 : i32, i32
  }
  func.func @transform_1(%arg0: i32, %arg1: i32) -> (i32, i32) {
    %c0_i32 = arith.constant 0 : i32
    %c0_i32_0 = arith.constant 0 : i32
    return %c0_i32, %arg1 : i32, i32
  }
  func.func @transform_2(%arg0: i32, %arg1: i32) -> (i32, i32) {
    %c0_i32 = arith.constant 0 : i32
    %c0_i32_0 = arith.constant 0 : i32
    return %arg0, %c0_i32 : i32, i32
  }
  func.func @transform_3(%arg0: i32, %arg1: i32) -> (i32, i32) {
    %c0_i32 = arith.constant 0 : i32
    %c0_i32_0 = arith.constant 0 : i32
    return %c0_i32, %arg1 : i32, i32
  }
  func.func @transform_4(%arg0: i32, %arg1: i32) -> (i32, i32) {
    %c0_i32 = arith.constant 0 : i32
    return %arg0, %arg1 : i32, i32
  }
}

</mosaic_0001>

<bundles_post_ra>
// kernel: tpu_custom_call.1
= control target key start
LH: loop header
LB: loop body
LE: loop exit
PB: predicated region body
PF: predicated region fallthrough
CT: control target
= control target key end

     0   :  { %9 = vsyncpa [#allocation3], 0  ;;  %s393_s0 = inlined_call_operand.hbm [shape: f32[4,32], index: 0, kind: input, shape index: {}]   ;;  %s394_s1 = inlined_call_operand.hbm [shape: f32[32,256], index: 1, kind: input, shape index: {}]   ;;  %s395_s2 = inlined_call_operand.hbm [shape: f32[4,8], index: 2, kind: input, shape index: {}]   ;;  %s396_s3 = inlined_call_operand.hbm [shape: f32[8,256], index: 3, kind: input, shape index: {}]   ;;  %s397_s4 = inlined_call_operand.hbm [shape: f32[4,256], index: 4, kind: output, shape index: {}]  }
   0x1   :  { %10 = vsyncpa [#allocation6], 0 }
   0x2   :  { %11 = vsyncpa [#allocation9], 0  ;;  %s28_s17 = sshll.u32 %s394_s1, 4  ;;  %s29_s17 = int_to_ptr.hbm [resolvable:$true] %s28_s17 }
   0x3   :  { %12 = vsyncpa [#allocation4], 0  ;;  %s344_s18 = smov [#allocation5]   ;;  %s18_s22 = sshll.u32 %s393_s0, 4  ;;  %s19_s22 = int_to_ptr.hbm [resolvable:$true] %s18_s22 }
   0x4   :  { %s30_s19 = sshll.u32 %s344_s18, 4  ;;  %s345_s23 = smov 256   ;;  %s31_s19 = int_to_ptr.vmem [resolvable:$true] %s30_s19 }
   0x5   :  { %s346_s24 = smov 16   ;;  %s347_s25 = smov [#allocation2]  }
   0x6   :  { %36 = dma.hbm_to_vmem [thread:$0]  %s29_s17, 1024, %s31_s19, [#allocation6], %s345_s23, %s345_s23, %s346_s24  }
   0x7   :  { %s20_s26 = sshll.u32 %s347_s25, 4  ;;  %s42_s29 = sshll.u32 %s395_s2, 4  ;;  %s21_s26 = int_to_ptr.vmem [resolvable:$true] %s20_s26  ;;  %s43_s29 = int_to_ptr.hbm [resolvable:$true] %s42_s29 }
   0x8   :  { %23 = dma.hbm_to_vmem [thread:$0]  %s19_s22, 64, %s21_s26, [#allocation3]  }
   0x9   :  { %s53_s5 = sshll.u32 %s396_s3, 4  ;;  %s348_s6 = smov [#allocation7]   ;;  %s54_s5 = int_to_ptr.hbm [resolvable:$true] %s53_s5 }
   0xa   :  { %s44_s7 = sshll.u32 %s348_s6, 4  ;;  %s349_s0 = smov [#allocation8]   ;;  %s45_s7 = int_to_ptr.vmem [resolvable:$true] %s44_s7 }
   0xb   :  { %47 = dma.hbm_to_vmem [thread:$0]  %s43_s29, 64, %s45_s7, [#allocation6]  }
   0xc   :  { %s55_s8 = sshll.u32 %s349_s0, 4  ;;  %s56_s8 = int_to_ptr.vmem [resolvable:$true] %s55_s8 }
   0xd   :  { %58 = dma.hbm_to_vmem [thread:$0]  %s54_s5, 256, %s56_s8, [#allocation9]  }
   0xe   :  { %336 = dma.done.wait [#allocation3], 64  }
   0xf   :  { %337 = vsyncadd [#allocation3], 4294967232 }
  0x10   :  { %338 = dma.done.wait [#allocation6], 1088  }
  0x11   :  { %339 = vsyncadd [#allocation6], 4294966208 }
  0x12   :  { %340 = dma.done.wait [#allocation9], 256  }
  0x13   :  { %341 = vsyncadd [#allocation9], 4294967040  ;;  %v83_v0 = vld [vmem:[#allocation5 + $0x38] sm:$0xff]  ;;  %v82_v1 = vld [vmem:[#allocation5 + $0x30] sm:$0xff]  ;;  %vm133_vm0 = vcmask 64512   ;;  %vm84_vm1 = vcmask 261120  }
  0x14   :  { %v81_v2 = vld [vmem:[#allocation5 + $0x28] sm:$0xff]  ;;  %120 = vmatpush.msra.mxu1 %v83_v0  ;;  %100 = vmatpush.msra.mxu0 %v82_v1  ;;  %v130_v4 = vld [vmem:[#allocation7] sm:$0xf]  ;;  %v79_v6 = vld [vmem:[#allocation5 + $0x18] sm:$0xff]  ;;  %s350_s2 = smov [#allocation10]   ;;  %s193_s11 = sshll.u32 %s397_s4, 4  ;;  %s194_s11 = int_to_ptr.hbm [resolvable:$true] %s193_s11 }
  0x15   :  { %v132_v3 = vld [vmem:[#allocation8 + $0x8] sm:$0xff]  ;;  %v80_v5 = vld [vmem:[#allocation5 + $0x20] sm:$0xff]  ;;  %v75_v10 = vld [vmem:[#allocation2] sm:$0xf]  ;;  %s191_s3 = sshll.u32 %s350_s2, 4  ;;  %vm182_vm2 = vcmask 1043456   ;;  %s192_s3 = int_to_ptr.vmem [resolvable:$true] %s191_s3 }
  0x16   :  { %172 = vmatpush.msra.mxu3 %v132_v3  ;;  %v131_v7 = vld [vmem:[#allocation8] sm:$0xff]  ;;  %121 = vmatpush.msra.mxu1 %v81_v2  ;;  %v78_v8 = vld [vmem:[#allocation5 + $0x10] sm:$0xff] }
  0x17   :  { %208 = vmatmul.msk.f32.vlgmr.msra.gmra.mxu3 %vm133_vm0, %v130_v4  ;;  %101 = vmatpush.msra.mxu0 %v80_v5  ;;  %v77_v9 = vld [vmem:[#allocation5 + $0x8] sm:$0xff]  ;;  %v76_v11 = vld [vmem:[#allocation5] sm:$0xff] }
  0x18   :  { %152 = vmatpush.msra.mxu2 %v131_v7  ;;  %122 = vmatpush.msra.mxu1 %v79_v6 }
  0x19   :  { %207 = vmatmul.msk.f32.vlgmr.msra.gmra.mxu2 %vm133_vm0, %v130_v4  ;;  %102 = vmatpush.msra.mxu0 %v78_v8 }
  0x1a   :  { %123 = vmatpush.msra.mxu1 %v77_v9 }
  0x1b   :  { %206 = vmatmul.msk.f32.vlgmr.msra.gmra.mxu1 %vm84_vm1, %v75_v10  ;;  %103 = vmatpush.msra.mxu0 %v76_v11 }
  0x1c   :  { %205 = vmatmul.msk.f32.vlgmr.msra.gmra.mxu0 %vm84_vm1, %v75_v10 }
  0x98   :  { %v125_v12 = vpop.f32.mrf.mxu1 }
  0x99   :  { %v129_v13 = vmul.f32 0.0625, %v125_v12  ;;  %v105_v14 = vpop.f32.mrf.mxu0 }
  0x9a   :  { %v174_v15 = vpop.f32.mrf.mxu3  ;;  %v128_v16 = vmul.f32 0.0625, %v105_v14 }
  0x9b   :  { %v178_v17 = vmul.f32 %v174_v15, %v129_v13 }
  0x9c   :  { %v154_v18 = vpop.f32.mrf.mxu2 }
  0x9d   :  { %v177_v19 = vmul.f32 %v154_v18, %v128_v16  ;;  %v181_v20 = vrot.slane %v178_v17, 4 }
  0x9f   :  { %v183_v21 = vsel %vm182_vm2, %v177_v19, %v181_v20 }
  0xa0   :  { %185 = vst [vmem:[#allocation10] sm:$0xff] %v183_v21 }
  0xa1   :  { %196 = dma.vmem_to_hbm [thread:$0]  %s192_s3, 128, %s194_s11, [#allocation4]  }
  0xa2   :  { %342 = dma.done.wait [#allocation4], 128  }
  0xa3   :  { %343 = vsyncadd [#allocation4], 4294967168 }
  0xa4   :  { %201 = vsyncpa [#allocation3], 1 }
  0xa5   :  { %202 = vsyncpa [#allocation6], 1 }
  0xa6   :  { %203 = vsyncpa [#allocation9], 1 }
  0xa7   :  { %204 = vsyncpa [#allocation4], 1 }

</bundles_post_ra>
